<compile_context>
chip_gen: v6e
topology: v6e:2x2x1
jax: 0.10.0
libtpu: 0.0.40
codegen_flags: <defaults>
</compile_context>

<pallas_src>
import jax
import jax.numpy as jnp
from jax.experimental import pallas as pl
from jax.experimental.pallas import tpu as pltpu

LOG_SIG_MAX = 2.0
LOG_SIG_MIN = -20.0
LANES = 128  # one vreg lane width; everything is packed to this


# --------------------------------------------------------------------------
# Kernel factory: one grid step == one policy/LSTM step of the rollout.
# --------------------------------------------------------------------------
def _make_kernel(H, offs):
    R_W1, R_B1, R_W2, R_B2, R_WIH, R_WHH, R_BG, R_WHEAD, R_WC, R_BHEAD = offs

    def kernel(w_ref, hc0_ref, state_ref, out_ref, h_scr, c_scr):
        t = pl.program_id(0)
        f32 = jnp.float32

        # Initialize the carried recurrent state once (scratch persists across the T grid).
        @pl.when(t == 0)
        def _():
            h_scr[...] = hc0_ref[:, :H]
            c_scr[...] = hc0_ref[:, H:2 * H]

        # MLP trunk: two fused GEMM + bias + ReLU. Weight rows beyond the true fan-in are
        # zero, and activation lanes beyond H stay exactly 0 through ReLU, so K is padded
        # to 128 with no numerical effect and no lane slicing of activations is needed.
        x = state_ref[...]                                                  # (B, 128)
        x = jnp.dot(x, w_ref[R_W1:R_W1 + LANES, :], preferred_element_type=f32)
        x = jnp.maximum(x + w_ref[R_B1:R_B1 + 1, :], 0.0)
        x = jnp.dot(x, w_ref[R_W2:R_W2 + LANES, :], preferred_element_type=f32)
        x = jnp.maximum(x + w_ref[R_B2:R_B2 + 1, :], 0.0)

        # LSTM gates: x @ W_ih + h @ W_hh + (b_ih + b_hh). No [x|h] lane concat.
        gates = (
            jnp.dot(x, w_ref[R_WIH:R_WIH + LANES, :], preferred_element_type=f32)
            + jnp.dot(h_scr[...], w_ref[R_WHH:R_WHH + H, :], preferred_element_type=f32)
            + w_ref[R_BG:R_BG + 1, :]
        )                                                                   # (B, 4H)

        # Full-width transcendentals, slice quarters afterwards (i, f, g, o order).
        sig = jax.nn.sigmoid(gates)
        tnh = jnp.tanh(gates)
        i_g = sig[:, 0 * H:1 * H]
        f_g = sig[:, 1 * H:2 * H]
        g_g = tnh[:, 2 * H:3 * H]
        o_g = sig[:, 3 * H:4 * H]
        c_new = f_g * c_scr[...] + i_g * g_g
        h_new = o_g * jnp.tanh(c_new)
        h_scr[...] = h_new
        c_scr[...] = c_new

        # Heads + output packing in one shot: the head weight block carries an identity
        # placement for h' (lanes 0..H-1), mean weights at lanes 2H.., log_std weights at
        # lanes 3H..; a second tiny dot places c' at lanes H..2H-1. Result is already the
        # packed [h'|c'|mean|0|log_std|0] slab -> one unmasked lane-dense (B,128) store.
        out = (
            jnp.dot(h_new, w_ref[R_WHEAD:R_WHEAD + H, :], preferred_element_type=f32)
            + jnp.dot(c_new, w_ref[R_WC:R_WC + H, :], preferred_element_type=f32)
            + w_ref[R_BHEAD:R_BHEAD + 1, :]
        )
        lane = jax.lax.broadcasted_iota(jnp.int32, out.shape, 1)
        out = jnp.where(lane >= 3 * H, jnp.clip(out, LOG_SIG_MIN, LOG_SIG_MAX), out)
        out_ref[...] = out

    return kernel


# --------------------------------------------------------------------------
# One-time parameter fusion: all weights/biases packed into a single (R,128)
# slab at 8-aligned row offsets (built once, outside the hot path).
# --------------------------------------------------------------------------
def pack_params(params, num_inputs, num_actions, hidden_dim):
    NI, H, A = num_inputs, hidden_dim, num_actions
    assert 4 * H <= LANES, "kernel packs gates/outputs into a single 128-lane vreg"
    assert NI <= LANES and A <= H and H % 8 == 0

    R_W1 = 0                    # (128,128): rows 0..NI-1 cols 0..H-1 = w1 (K padded to 128)
    R_B1 = R_W1 + LANES         # row 0 cols 0..H-1 = b1
    R_W2 = R_B1 + 8             # (128,128): rows 0..H-1 cols 0..H-1 = w2
    R_B2 = R_W2 + LANES
    R_WIH = R_B2 + 8            # (128,128): rows 0..H-1 cols 0..4H-1 = W_ih
    R_WHH = R_WIH + LANES       # (H,128):   cols 0..4H-1 = W_hh
    R_BG = R_WHH + H            # row 0 cols 0..4H-1 = b_ih + b_hh
    R_WHEAD = R_BG + 8          # (H,128): I_H @ cols 0..H-1, W_mean @ 2H.., W_logstd @ 3H..
    R_WC = R_WHEAD + H          # (H,128): I_H @ cols H..2H-1  (c' placement)
    R_BHEAD = R_WC + H          # row 0: b_mean @ 2H.., b_logstd @ 3H..
    n_rows = R_BHEAD + 8

    eye = jnp.eye(H, dtype=jnp.float32)
    slab = jnp.zeros((n_rows, LANES), jnp.float32)
    slab = slab.at[R_W1:R_W1 + NI, :H].set(params["w1"])
    slab = slab.at[R_B1, :H].set(params["b1"].reshape(H))
    slab = slab.at[R_W2:R_W2 + H, :H].set(params["w2"])
    slab = slab.at[R_B2, :H].set(params["b2"].reshape(H))
    slab = slab.at[R_WIH:R_WIH + H, :4 * H].set(params["w_ih"])
    slab = slab.at[R_WHH:R_WHH + H, :4 * H].set(params["w_hh"])
    slab = slab.at[R_BG, :4 * H].set((params["b_ih"] + params["b_hh"]).reshape(4 * H))
    slab = slab.at[R_WHEAD:R_WHEAD + H, 0:H].set(eye)                       # h' placement
    slab = slab.at[R_WHEAD:R_WHEAD + H, 2 * H:2 * H + A].set(params["w_mean"])
    slab = slab.at[R_WHEAD:R_WHEAD + H, 3 * H:3 * H + A].set(params["w_logstd"])
    slab = slab.at[R_WC:R_WC + H, H:2 * H].set(eye)                         # c' placement
    slab = slab.at[R_BHEAD, 2 * H:2 * H + A].set(params["b_mean"].reshape(A))
    slab = slab.at[R_BHEAD, 3 * H:3 * H + A].set(params["b_logstd"].reshape(A))

    offs = (R_W1, R_B1, R_W2, R_B2, R_WIH, R_WHH, R_BG, R_WHEAD, R_WC, R_BHEAD)
    return {"slab": slab, "offs": offs, "NI": NI, "H": H, "A": A}


# --------------------------------------------------------------------------
# Wrappers.
# --------------------------------------------------------------------------
def accident_policy_rollout(states, rnn_state, fused):
    """Run T policy/LSTM steps in ONE pallas_call.

    states: (T, B, num_inputs).  Returns (mean (T,B,A), log_std (T,B,A), (h_T, c_T)).
    """
    h0, c0 = rnn_state
    T, B, NI = states.shape
    H, A = fused["H"], fused["A"]
    slab = fused["slab"]

    states_p = jnp.pad(states.astype(jnp.float32), ((0, 0), (0, 0), (0, LANES - NI)))
    hc0 = jnp.concatenate([h0, c0], axis=-1).astype(jnp.float32)           # (B, 2H)

    kernel = _make_kernel(H, fused["offs"])
    packed = pl.pallas_call(
        kernel,
        out_shape=jax.ShapeDtypeStruct((T, B, LANES), jnp.float32),
        grid_spec=pltpu.PrefetchScalarGridSpec(
            num_scalar_prefetch=0,
            grid=(T,),
            in_specs=[
                # parameter slab: constant block index -> DMA'd once, VMEM-resident for all T
                pl.BlockSpec(slab.shape, lambda t: (0, 0)),
                # initial (h, c): loaded once
                pl.BlockSpec((B, 2 * H), lambda t: (0, 0)),
                # per-step state stream, blocked along T
                pl.BlockSpec((None, B, LANES), lambda t: (t, 0, 0)),
            ],
            out_specs=pl.BlockSpec((None, B, LANES), lambda t: (t, 0, 0)),
            scratch_shapes=[pltpu.VMEM((B, H), jnp.float32),               # h carry
                            pltpu.VMEM((B, H), jnp.float32)],              # c carry
        ),
        compiler_params=pltpu.CompilerParams(
            dimension_semantics=("arbitrary",)),                            # h/c carried across T
    )(slab, hc0, states_p)

    mean = packed[:, :, 2 * H:2 * H + A]
    log_std = packed[:, :, 3 * H:3 * H + A]
    h_t = packed[-1, :, 0:H]
    c_t = packed[-1, :, H:2 * H]
    return mean, log_std, (h_t, c_t)


def accident_policy_forward(state, rnn_state, fused):
    """Single step == AccidentPolicy.forward(state, rnn_state) for the Gaussian/MLP config."""
    mean, log_std, hc = accident_policy_rollout(state[None], rnn_state, fused)
    return mean[0], log_std[0], hc


# --------------------------------------------------------------------------
# Deterministic parameter init (mirrors weights_init_: xavier for Linear,
# orthogonal / normal for LSTMCell). Weights stored pre-transposed [in, out].
# --------------------------------------------------------------------------
def xavier_uniform(key, fan_in, fan_out):
    limit = jnp.sqrt(6.0 / (fan_in + fan_out))
    return jax.random.uniform(key, (fan_in, fan_out), jnp.float32, -limit, limit)


def orthogonal(key, rows, cols):
    a = jax.random.normal(key, (rows, cols), jnp.float32)
    q, r = jnp.linalg.qr(a)
    q = q * jnp.sign(jnp.diagonal(r))[None, :]
    return q


def init_params(key, num_inputs, num_actions, hidden_dim):
    keys = jax.random.split(key, 8)
    return {
        "w1": xavier_uniform(keys[0], num_inputs, hidden_dim),
        "b1": jnp.zeros((1, hidden_dim), jnp.float32),
        "w2": xavier_uniform(keys[1], hidden_dim, hidden_dim),
        "b2": jnp.zeros((1, hidden_dim), jnp.float32),
        # LSTMCell: weight_ih [4H, H_in], weight_hh [4H, H] in torch -> stored transposed [in, 4H]
        "w_ih": orthogonal(keys[2], 4 * hidden_dim, hidden_dim).T,
        "w_hh": orthogonal(keys[3], 4 * hidden_dim, hidden_dim).T,
        "b_ih": jax.random.normal(keys[4], (1, 4 * hidden_dim), jnp.float32),
        "b_hh": jax.random.normal(keys[5], (1, 4 * hidden_dim), jnp.float32),
        "w_mean": xavier_uniform(keys[6], hidden_dim, num_actions),
        "b_mean": jnp.zeros((1, num_actions), jnp.float32),
        "w_logstd": xavier_uniform(keys[7], hidden_dim, num_actions),
        "b_logstd": jnp.zeros((1, num_actions), jnp.float32),
    }


# --------------------------------------------------------------------------
# Pure-JAX reference (uses the ORIGINAL unfused params).
# --------------------------------------------------------------------------
def reference_forward(state, rnn_state, p):
    h0, c0 = rnn_state
    x = jax.nn.relu(state @ p["w1"] + p["b1"])
    x = jax.nn.relu(x @ p["w2"] + p["b2"])
    gates = x @ p["w_ih"] + p["b_ih"] + h0 @ p["w_hh"] + p["b_hh"]
    H = h0.shape[1]
    i = jax.nn.sigmoid(gates[:, 0 * H:1 * H])
    f = jax.nn.sigmoid(gates[:, 1 * H:2 * H])
    g = jnp.tanh(gates[:, 2 * H:3 * H])
    o = jax.nn.sigmoid(gates[:, 3 * H:4 * H])
    c_new = f * c0 + i * g
    h_new = o * jnp.tanh(c_new)
    mean = h_new @ p["w_mean"] + p["b_mean"]
    log_std = jnp.clip(h_new @ p["w_logstd"] + p["b_logstd"], LOG_SIG_MIN, LOG_SIG_MAX)
    return mean, log_std, (h_new, c_new)


if __name__ == "__main__":
    B, NUM_INPUTS, HIDDEN, NUM_ACTIONS, T = 8, 16, 32, 4, 6

    key = jax.random.PRNGKey(0)
    k_param, k_state, k_h, k_c, k_seq = jax.random.split(key, 5)

    params = init_params(k_param, NUM_INPUTS, NUM_ACTIONS, HIDDEN)
    fused = pack_params(params, NUM_INPUTS, NUM_ACTIONS, HIDDEN)

    state = jax.random.normal(k_state, (B, NUM_INPUTS), jnp.float32)
    h0 = jax.random.normal(k_h, (B, HIDDEN), jnp.float32)
    c0 = jax.random.normal(k_c, (B, HIDDEN), jnp.float32)

    # --- single step (== AccidentPolicy.forward with rnn_state given) ---
    mean, log_std, (h1, c1) = accident_policy_forward(state, (h0, c0), fused)
    jax.block_until_ready((mean, log_std, h1, c1))

    r_mean, r_log_std, (r_h, r_c) = reference_forward(state, (h0, c0), params)
    assert jnp.allclose(mean, r_mean, atol=1e-4, rtol=1e-4)
    assert jnp.allclose(log_std, r_log_std, atol=1e-4, rtol=1e-4)
    assert jnp.allclose(h1, r_h, atol=1e-4, rtol=1e-4)
    assert jnp.allclose(c1, r_c, atol=1e-4, rtol=1e-4)

    # --- in-kernel rollout over T steps (weights DMA'd once, h/c carried in VMEM) ---
    states = jax.random.normal(k_seq, (T, B, NUM_INPUTS), jnp.float32)
    mean_seq, log_std_seq, (hT, cT) = accident_policy_rollout(states, (h0, c0), fused)
    jax.block_until_ready((mean_seq, log_std_seq, hT, cT))

    rh, rc = h0, c0
    for t in range(T):
        rm, rls, (rh, rc) = reference_forward(states[t], (rh, rc), params)
        assert jnp.allclose(mean_seq[t], rm, atol=1e-4, rtol=1e-4)
        assert jnp.allclose(log_std_seq[t], rls, atol=1e-4, rtol=1e-4)
    assert jnp.allclose(hT, rh, atol=1e-4, rtol=1e-4)
    assert jnp.allclose(cT, rc, atol=1e-4, rtol=1e-4)

    print("KERNEL_OK")
</pallas_src>

<mosaic_0001>
module attributes {stable_mosaic.version = 11 : i64} {
  func.func @kernel(%arg0: i32, %arg1: memref<512x128xf32, #tpu.memory_space<vmem>>, %arg2: memref<8x64xf32, #tpu.memory_space<vmem>>, %arg3: memref<1x8x128xf32, #tpu.memory_space<vmem>>, %arg4: memref<1x8x128xf32, #tpu.memory_space<vmem>>, %arg5: memref<8x32xf32, #tpu.memory_space<vmem>>, %arg6: memref<8x32xf32, #tpu.memory_space<vmem>>) attributes {dimension_semantics = [#tpu.dimension_semantics<arbitrary>], iteration_bounds = array<i64: 1>, scalar_prefetch = 0 : i64, scratch_operands = 2 : i64, tpu.core_type = #tpu.core_type<tc>, window_params = [{pipeline_mode = #tpu.pipeline_mode<synchronous>, transform_indices = @transform_0, window_bounds = array<i64: 512, 128>}, {pipeline_mode = #tpu.pipeline_mode<synchronous>, transform_indices = @transform_1, window_bounds = array<i64: 8, 64>}, {transform_indices = @transform_2, window_bounds = array<i64: 1, 8, 128>}, {transform_indices = @transform_3, window_bounds = array<i64: 1, 8, 128>}]} {
    %c0_i32 = arith.constant 0 : i32
    %0 = arith.cmpi eq, %arg0, %c0_i32 : i32
    %1 = arith.extui %0 : i1 to i32
    %c0_i32_0 = arith.constant 0 : i32
    %2 = arith.cmpi ne, %1, %c0_i32_0 : i32
    scf.if %2 {
      %c0_35 = arith.constant 0 : index
      %c0_36 = arith.constant 0 : index
      %65 = vector.load %arg2[%c0_35, %c0_36] : memref<8x64xf32, #tpu.memory_space<vmem>>, vector<8x32xf32>
      %c0_37 = arith.constant 0 : index
      %c0_38 = arith.constant 0 : index
      %66 = vector.load %arg5[%c0_37, %c0_38] : memref<8x32xf32, #tpu.memory_space<vmem>>, vector<8x32xf32>
      tpu.vector_store %arg5[%c0_37, %c0_38], %65 {strides = array<i32>} : memref<8x32xf32, #tpu.memory_space<vmem>>, vector<8x32xf32>,
      %c0_39 = arith.constant 0 : index
      %c32 = arith.constant 32 : index
      %67 = vector.load %arg2[%c0_39, %c32] : memref<8x64xf32, #tpu.memory_space<vmem>>, vector<8x32xf32>
      %c0_40 = arith.constant 0 : index
      %c0_41 = arith.constant 0 : index
      %68 = vector.load %arg6[%c0_40, %c0_41] : memref<8x32xf32, #tpu.memory_space<vmem>>, vector<8x32xf32>
      tpu.vector_store %arg6[%c0_40, %c0_41], %67 {strides = array<i32>} : memref<8x32xf32, #tpu.memory_space<vmem>>, vector<8x32xf32>,
    } else {
    }
    %c0 = arith.constant 0 : index
    %c0_1 = arith.constant 0 : index
    %c0_2 = arith.constant 0 : index
    %3 = vector.load %arg3[%c0, %c0_1, %c0_2] : memref<1x8x128xf32, #tpu.memory_space<vmem>>, vector<1x8x128xf32>
    %4 = vector.shape_cast %3 : vector<1x8x128xf32> to vector<8x128xf32>
    %c0_3 = arith.constant 0 : index
    %c0_4 = arith.constant 0 : index
    %5 = vector.load %arg1[%c0_3, %c0_4] : memref<512x128xf32, #tpu.memory_space<vmem>>, vector<128x128xf32>
    %cst = arith.constant dense<0.000000e+00> : vector<8x128xf32>
    %6 = tpu.matmul %4, %5, %cst {dimension_numbers = #tpu.dot_dimension_numbers<[1], [0], [0], [1], [0, 0, 1, 1], [], []>} : vector<8x128xf32>, vector<128x128xf32>, vector<8x128xf32> -> vector<8x128xf32>
    %c128 = arith.constant 128 : index
    %c0_5 = arith.constant 0 : index
    %7 = vector.load %arg1[%c128, %c0_5] : memref<512x128xf32, #tpu.memory_space<vmem>>, vector<1x128xf32>
    %8 = vector.broadcast %7 : vector<1x128xf32> to vector<8x128xf32>
    %9 = arith.addf %6, %8 : vector<8x128xf32>
    %cst_6 = arith.constant 0.000000e+00 : f32
    %10 = vector.broadcast %cst_6 : f32 to vector<8x128xf32>
    %11 = arith.maximumf %9, %10 : vector<8x128xf32>
    %c136 = arith.constant 136 : index
    %c0_7 = arith.constant 0 : index
    %12 = vector.load %arg1[%c136, %c0_7] : memref<512x128xf32, #tpu.memory_space<vmem>>, vector<128x128xf32>
    %cst_8 = arith.constant dense<0.000000e+00> : vector<8x128xf32>
    %13 = tpu.matmul %11, %12, %cst_8 {dimension_numbers = #tpu.dot_dimension_numbers<[1], [0], [0], [1], [0, 0, 1, 1], [], []>} : vector<8x128xf32>, vector<128x128xf32>, vector<8x128xf32> -> vector<8x128xf32>
    %c264 = arith.constant 264 : index
    %c0_9 = arith.constant 0 : index
    %14 = vector.load %arg1[%c264, %c0_9] : memref<512x128xf32, #tpu.memory_space<vmem>>, vector<1x128xf32>
    %15 = vector.broadcast %14 : vector<1x128xf32> to vector<8x128xf32>
    %16 = arith.addf %13, %15 : vector<8x128xf32>
    %cst_10 = arith.constant 0.000000e+00 : f32
    %17 = vector.broadcast %cst_10 : f32 to vector<8x128xf32>
    %18 = arith.maximumf %16, %17 : vector<8x128xf32>
    %c272 = arith.constant 272 : index
    %c0_11 = arith.constant 0 : index
    %19 = vector.load %arg1[%c272, %c0_11] : memref<512x128xf32, #tpu.memory_space<vmem>>, vector<128x128xf32>
    %cst_12 = arith.constant dense<0.000000e+00> : vector<8x128xf32>
    %20 = tpu.matmul %18, %19, %cst_12 {dimension_numbers = #tpu.dot_dimension_numbers<[1], [0], [0], [1], [0, 0, 1, 1], [], []>} : vector<8x128xf32>, vector<128x128xf32>, vector<8x128xf32> -> vector<8x128xf32>
    %c0_13 = arith.constant 0 : index
    %c0_14 = arith.constant 0 : index
    %21 = vector.load %arg5[%c0_13, %c0_14] : memref<8x32xf32, #tpu.memory_space<vmem>>, vector<8x32xf32>
    %c400 = arith.constant 400 : index
    %c0_15 = arith.constant 0 : index
    %22 = vector.load %arg1[%c400, %c0_15] : memref<512x128xf32, #tpu.memory_space<vmem>>, vector<32x128xf32>
    %cst_16 = arith.constant dense<0.000000e+00> : vector<8x128xf32>
    %23 = tpu.matmul %21, %22, %cst_16 {dimension_numbers = #tpu.dot_dimension_numbers<[1], [0], [0], [1], [0, 0, 1, 1], [], []>} : vector<8x32xf32>, vector<32x128xf32>, vector<8x128xf32> -> vector<8x128xf32>
    %24 = arith.addf %20, %23 : vector<8x128xf32>
    %c432 = arith.constant 432 : index
    %c0_17 = arith.constant 0 : index
    %25 = vector.load %arg1[%c432, %c0_17] : memref<512x128xf32, #tpu.memory_space<vmem>>, vector<1x128xf32>
    %26 = vector.broadcast %25 : vector<1x128xf32> to vector<8x128xf32>
    %27 = arith.addf %24, %26 : vector<8x128xf32>
    %28 = arith.negf %27 : vector<8x128xf32>
    %29 = math.exp %28 : vector<8x128xf32>
    %cst_18 = arith.constant 1.000000e+00 : f32
    %30 = vector.broadcast %cst_18 : f32 to vector<8x128xf32>
    %31 = arith.addf %30, %29 : vector<8x128xf32>
    %32 = arith.divf %30, %31 : vector<8x128xf32>
    %33 = math.tanh %27 : vector<8x128xf32>
    %34 = vector.extract_strided_slice %32 {offsets = [0, 0], sizes = [8, 32], strides = [1, 1]} : vector<8x128xf32> to vector<8x32xf32>
    %35 = vector.extract_strided_slice %32 {offsets = [0, 32], sizes = [8, 32], strides = [1, 1]} : vector<8x128xf32> to vector<8x32xf32>
    %36 = vector.extract_strided_slice %33 {offsets = [0, 64], sizes = [8, 32], strides = [1, 1]} : vector<8x128xf32> to vector<8x32xf32>
    %37 = vector.extract_strided_slice %32 {offsets = [0, 96], sizes = [8, 32], strides = [1, 1]} : vector<8x128xf32> to vector<8x32xf32>
    %c0_19 = arith.constant 0 : index
    %c0_20 = arith.constant 0 : index
    %38 = vector.load %arg6[%c0_19, %c0_20] : memref<8x32xf32, #tpu.memory_space<vmem>>, vector<8x32xf32>
    %39 = arith.mulf %35, %38 : vector<8x32xf32>
    %40 = arith.mulf %34, %36 : vector<8x32xf32>
    %41 = arith.addf %39, %40 : vector<8x32xf32>
    %42 = math.tanh %41 : vector<8x32xf32>
    %43 = arith.mulf %37, %42 : vector<8x32xf32>
    %c0_21 = arith.constant 0 : index
    %c0_22 = arith.constant 0 : index
    %44 = vector.load %arg5[%c0_21, %c0_22] : memref<8x32xf32, #tpu.memory_space<vmem>>, vector<8x32xf32>
    tpu.vector_store %arg5[%c0_21, %c0_22], %43 {strides = array<i32>} : memref<8x32xf32, #tpu.memory_space<vmem>>, vector<8x32xf32>,
    %c0_23 = arith.constant 0 : index
    %c0_24 = arith.constant 0 : index
    %45 = vector.load %arg6[%c0_23, %c0_24] : memref<8x32xf32, #tpu.memory_space<vmem>>, vector<8x32xf32>
    tpu.vector_store %arg6[%c0_23, %c0_24], %41 {strides = array<i32>} : memref<8x32xf32, #tpu.memory_space<vmem>>, vector<8x32xf32>,
    %c440 = arith.constant 440 : index
    %c0_25 = arith.constant 0 : index
    %46 = vector.load %arg1[%c440, %c0_25] : memref<512x128xf32, #tpu.memory_space<vmem>>, vector<32x128xf32>
    %cst_26 = arith.constant dense<0.000000e+00> : vector<8x128xf32>
    %47 = tpu.matmul %43, %46, %cst_26 {dimension_numbers = #tpu.dot_dimension_numbers<[1], [0], [0], [1], [0, 0, 1, 1], [], []>} : vector<8x32xf32>, vector<32x128xf32>, vector<8x128xf32> -> vector<8x128xf32>
    %c472 = arith.constant 472 : index
    %c0_27 = arith.constant 0 : index
    %48 = vector.load %arg1[%c472, %c0_27] : memref<512x128xf32, #tpu.memory_space<vmem>>, vector<32x128xf32>
    %cst_28 = arith.constant dense<0.000000e+00> : vector<8x128xf32>
    %49 = tpu.matmul %41, %48, %cst_28 {dimension_numbers = #tpu.dot_dimension_numbers<[1], [0], [0], [1], [0, 0, 1, 1], [], []>} : vector<8x32xf32>, vector<32x128xf32>, vector<8x128xf32> -> vector<8x128xf32>
    %50 = arith.addf %47, %49 : vector<8x128xf32>
    %c504 = arith.constant 504 : index
    %c0_29 = arith.constant 0 : index
    %51 = vector.load %arg1[%c504, %c0_29] : memref<512x128xf32, #tpu.memory_space<vmem>>, vector<1x128xf32>
    %52 = vector.broadcast %51 : vector<1x128xf32> to vector<8x128xf32>
    %53 = arith.addf %50, %52 : vector<8x128xf32>
    %54 = tpu.iota {dimensions = array<i32: 1>} : vector<8x128xi32>
    %c96_i32 = arith.constant 96 : i32
    %55 = vector.broadcast %c96_i32 : i32 to vector<8x128xi32>
    %56 = arith.cmpi sge, %54, %55 : vector<8x128xi32>
    %cst_30 = arith.constant -2.000000e+01 : f32
    %cst_31 = arith.constant 2.000000e+00 : f32
    %57 = vector.broadcast %cst_30 : f32 to vector<8x128xf32>
    %58 = arith.maximumf %57, %53 : vector<8x128xf32>
    %59 = vector.broadcast %cst_31 : f32 to vector<8x128xf32>
    %60 = arith.minimumf %59, %58 : vector<8x128xf32>
    %61 = arith.select %56, %60, %53 : vector<8x128xi1>, vector<8x128xf32>
    %c0_32 = arith.constant 0 : index
    %c0_33 = arith.constant 0 : index
    %c0_34 = arith.constant 0 : index
    %62 = vector.load %arg4[%c0_32, %c0_33, %c0_34] : memref<1x8x128xf32, #tpu.memory_space<vmem>>, vector<1x8x128xf32>
    %63 = vector.shape_cast %62 : vector<1x8x128xf32> to vector<8x128xf32>
    %64 = vector.shape_cast %61 : vector<8x128xf32> to vector<1x8x128xf32>
    tpu.vector_store %arg4[%c0_32, %c0_33, %c0_34], %64 {strides = array<i32>} : memref<1x8x128xf32, #tpu.memory_space<vmem>>, vector<1x8x128xf32>,
    return
  }
  func.func @transform_0(%arg0: i32) -> (i32, i32) {
    %c0_i32 = arith.constant 0 : i32
    %c0_i32_0 = arith.constant 0 : i32
    %c0_i32_1 = arith.constant 0 : i32
    return %c0_i32, %c0_i32_0 : i32, i32
  }
  func.func @transform_1(%arg0: i32) -> (i32, i32) {
    %c0_i32 = arith.constant 0 : i32
    %c0_i32_0 = arith.constant 0 : i32
    %c0_i32_1 = arith.constant 0 : i32
    return %c0_i32, %c0_i32_0 : i32, i32
  }
  func.func @transform_2(%arg0: i32) -> (i32, i32, i32) {
    %c0_i32 = arith.constant 0 : i32
    %c0_i32_0 = arith.constant 0 : i32
    %c0_i32_1 = arith.constant 0 : i32
    return %arg0, %c0_i32, %c0_i32_0 : i32, i32, i32
  }
  func.func @transform_3(%arg0: i32) -> (i32, i32, i32) {
    %c0_i32 = arith.constant 0 : i32
    %c0_i32_0 = arith.constant 0 : i32
    %c0_i32_1 = arith.constant 0 : i32
    return %arg0, %c0_i32, %c0_i32_0 : i32, i32, i32
  }
}

</mosaic_0001>

<bundles_post_ra>
// kernel: tpu_custom_call.1
= control target key start
LH: loop header
LB: loop body
LE: loop exit
PB: predicated region body
PF: predicated region fallthrough
CT: control target
= control target key end

     0   :  { %8 = vsyncpa [#allocation5], 0  ;;  %s1085_s0 = inlined_call_operand.hbm [shape: f32[512,128], index: 0, kind: input, shape index: {}]   ;;  %s1086_s1 = inlined_call_operand.hbm [shape: f32[8,64], index: 1, kind: input, shape index: {}]   ;;  %s1087_s2 = inlined_call_operand.hbm [shape: f32[1,8,128], index: 2, kind: input, shape index: {}]   ;;  %s1088_s3 = inlined_call_operand.hbm [shape: f32[1,8,128], index: 3, kind: output, shape index: {}]  }
   0x1   :  { %9 = vsyncpa [#allocation8], 0 }
   0x2   :  { %10 = vsyncpa [#allocation6], 0  ;;  %s958_s12 = smov [#allocation7]   ;;  %s959_s14 = smov [#allocation4]  }
   0x3   :  { %s29_s13 = sshll.u32 %s958_s12, 4  ;;  %s16_s15 = sshll.u32 %s959_s14, 4  ;;  %s30_s13 = int_to_ptr.vmem [resolvable:$true] %s29_s13  ;;  %s17_s15 = int_to_ptr.vmem [resolvable:$true] %s16_s15 }
   0x4   :  { %s880_s16 = scalar_lea.vmem %s30_s13, 128  ;;  %p885_p1 = scmp.lt.s32.totalorder %s30_s13, %s30_s13 }
   0x5   :  { %p881_p0 = scmp.ne.s32.totalorder %s30_s13, %s880_s16  ;;  %p886_p2 = scmp.lt.s32.totalorder %s880_s16, %s880_s16 }
   0x7   :  { %p887_p3 = por %p886_p2, %p885_p1 }
   0x9   :  { %p888_p4 = pnand %p887_p3, %p881_p0 }
   0xb   :  { %891 = shalt.err (!%p888_p4)
}
   0xc   :  { %32 = dma.hbm_to_vmem [thread:$0]  %s1086_s1, 128, %s30_s13, [#allocation8]  }
   0xd   :  { %s900_s19 = scalar_lea.vmem %s17_s15, 8192  ;;  %p905_p6 = scmp.lt.s32.totalorder %s17_s15, %s17_s15 }
   0xe   :  { %p901_p5 = scmp.ne.s32.totalorder %s17_s15, %s900_s19  ;;  %p906_p7 = scmp.lt.s32.totalorder %s900_s19, %s900_s19 }
  0x10   :  { %p907_p8 = por %p906_p7, %p905_p6 }
  0x12   :  { %p908_p9 = pnand %p907_p8, %p901_p5 }
  0x14   :  { %911 = shalt.err (!%p908_p9)
}
  0x15   :  { %s960_s20 = smov 128   ;;  %s961_s21 = smov 8  }
  0x16   :  { %22 = dma.hbm_to_vmem [thread:$0]  %s1085_s0, 8192, %s17_s15, [#allocation5], %s960_s20, %s960_s20, %s961_s21  }
  0x17   :  { %s962_s24 = smov [#allocation9]  }
  0x18   :  { %s39_s25 = sshll.u32 %s962_s24, 4  ;;  %s40_s25 = int_to_ptr.vmem [resolvable:$true] %s39_s25 }
  0x19   :  { %s920_s26 = scalar_lea.vmem %s40_s25, 128  ;;  %p925_p11 = scmp.lt.s32.totalorder %s40_s25, %s40_s25 }
  0x1a   :  { %p921_p10 = scmp.ne.s32.totalorder %s40_s25, %s920_s26  ;;  %p926_p12 = scmp.lt.s32.totalorder %s920_s26, %s920_s26 }
  0x1c   :  { %p927_p13 = por %p926_p12, %p925_p11 }
  0x1e   :  { %p928_p0 = pnand %p927_p13, %p921_p10 }
  0x20   :  { %931 = shalt.err (!%p928_p0)
}
  0x21   :  { %42 = dma.hbm_to_vmem [thread:$0]  %s1087_s2, 128, %s40_s25, [#allocation8]  }
  0x22   :  { %952 = dma.done.wait [#allocation5], 8192  }
  0x23   :  { %953 = vsyncadd [#allocation5], 4294959104 }
  0x24   :  { %954 = dma.done.wait [#allocation8], 256  }
  0x25   :  { %955 = vsyncadd [#allocation8], 4294967040  ;;  %v963_v0 = vmov 0.0   ;;  %vm964_vm0 = vmmov 0   ;;  %v81_v1 = vld [vmem:[#allocation4 + $0x78] sm:$0xff]  ;;  %v80_v2 = vld [vmem:[#allocation4 + $0x70] sm:$0xff] }
  0x26   :  { %715 = vmatprep.subr.mxu0 %v963_v0  ;;  %747 = vmatprep.mubr.msk.f32.mxu0 %vm964_vm0, %v963_v0  ;;  %v79_v3 = vld [vmem:[#allocation4 + $0x68] sm:$0xff]  ;;  %v78_v4 = vld [vmem:[#allocation4 + $0x60] sm:$0xff]  ;;  %v77_v6 = vld [vmem:[#allocation4 + $0x58] sm:$0xff]  ;;  %s965_s0 = smov 96   ;;  %vm57_vm1 = vcmask 261120   ;;  %s966_s2 = smov 32  }
  0x27   :  { %750 = vmatprep.subr.mxu1 %v963_v0  ;;  %782 = vmatprep.mubr.msk.f32.mxu1 %vm964_vm0, %v963_v0  ;;  %v173_v5 = vld [vmem:[#allocation4 + $0x100] sm:$0xff]  ;;  %v172_v7 = vld [vmem:[#allocation4 + $0xf8] sm:$0xff]  ;;  %v171_v8 = vld [vmem:[#allocation4 + $0xf0] sm:$0xff]  ;;  %s967_s28 = smov 64   ;;  %s968_s29 = smov [#allocation10]  }
  0x28   :  { %716 = vmatpush3.msra.mxu0 %v81_v1  ;;  %751 = vmatpush3.msra.mxu1 %v173_v5  ;;  %v76_v9 = vld [vmem:[#allocation4 + $0x50] sm:$0xff]  ;;  %v170_v10 = vld [vmem:[#allocation4 + $0xe8] sm:$0xff]  ;;  %v169_v12 = vld [vmem:[#allocation4 + $0xe0] sm:$0xff]  ;;  %s631_s30 = sshll.u32 %s968_s29, 4  ;;  %s632_s30 = int_to_ptr.vmem [resolvable:$true] %s631_s30 }
  0x29   :  { %717 = vmatprep.subr.mxu0 %v963_v0  ;;  %752 = vmatprep.subr.mxu1 %v963_v0  ;;  %v75_v11 = vld [vmem:[#allocation4 + $0x48] sm:$0xff]  ;;  %v74_v13 = vld [vmem:[#allocation4 + $0x40] sm:$0xff]  ;;  %v168_v14 = vld [vmem:[#allocation4 + $0xd8] sm:$0xff]  ;;  %s932_s4 = scalar_lea.vmem %s632_s30, 128  ;;  %p937_p2 = scmp.lt.s32.totalorder %s632_s30, %s632_s30 }
  0x2a   :  { %718 = vmatpush3.msra.mxu0 %v80_v2  ;;  %753 = vmatpush3.msra.mxu1 %v172_v7  ;;  %v73_v15 = vld [vmem:[#allocation4 + $0x38] sm:$0xff]  ;;  %v167_v16 = vld [vmem:[#allocation4 + $0xd0] sm:$0xff]  ;;  %v166_v18 = vld [vmem:[#allocation4 + $0xc8] sm:$0xff]  ;;  %p933_p1 = scmp.ne.s32.totalorder %s632_s30, %s932_s4  ;;  %p938_p3 = scmp.lt.s32.totalorder %s932_s4, %s932_s4 }
  0x2b   :  { %719 = vmatprep.subr.mxu0 %v963_v0  ;;  %754 = vmatprep.subr.mxu1 %v963_v0  ;;  %v72_v17 = vld [vmem:[#allocation4 + $0x30] sm:$0xff]  ;;  %v71_v19 = vld [vmem:[#allocation4 + $0x28] sm:$0xff]  ;;  %v165_v20 = vld [vmem:[#allocation4 + $0xc0] sm:$0xff] }
  0x2c   :  { %720 = vmatpush3.msra.mxu0 %v79_v3  ;;  %755 = vmatpush3.msra.mxu1 %v171_v8  ;;  %v70_v21 = vld [vmem:[#allocation4 + $0x20] sm:$0xff]  ;;  %v164_v22 = vld [vmem:[#allocation4 + $0xb8] sm:$0xff]  ;;  %v163_v24 = vld [vmem:[#allocation4 + $0xb0] sm:$0xff]  ;;  %p939_p4 = por %p938_p3, %p937_p2 }
  0x2d   :  { %721 = vmatprep.subr.mxu0 %v963_v0  ;;  %756 = vmatprep.subr.mxu1 %v963_v0  ;;  %v69_v23 = vld [vmem:[#allocation4 + $0x18] sm:$0xff]  ;;  %v68_v25 = vld [vmem:[#allocation4 + $0x10] sm:$0xff]  ;;  %v162_v26 = vld [vmem:[#allocation4 + $0xa8] sm:$0xff] }
  0x2e   :  { %722 = vmatpush3.msra.mxu0 %v78_v4  ;;  %757 = vmatpush3.msra.mxu1 %v170_v10  ;;  %v67_v27 = vld [vmem:[#allocation4 + $0x8] sm:$0xff]  ;;  %v161_v28 = vld [vmem:[#allocation4 + $0xa0] sm:$0xff]  ;;  %v160_v31 = vld [vmem:[#allocation4 + $0x98] sm:$0xff]  ;;  %p940_p5 = pnand %p939_p4, %p933_p1 }
  0x2f   :  { %723 = vmatprep.subr.mxu0 %v963_v0  ;;  %758 = vmatprep.subr.mxu1 %v963_v0  ;;  %v66_v29 = vld [vmem:[#allocation4] sm:$0xff]  ;;  %v65_v30 = vld [vmem:[#allocation9] sm:$0xff]  ;;  %v159_v32 = vld [vmem:[#allocation4 + $0x90] sm:$0xff] }
  0x30   :  { %724 = vmatpush3.msra.mxu0 %v77_v6  ;;  %759 = vmatpush3.msra.mxu1 %v169_v12  ;;  %v158_v33 = vld [vmem:[#allocation4 + $0x88] sm:$0xff]  ;;  %v59_v35 = vld [vmem:[#allocation7] sm:$0xff]  ;;  %v263_v44 = vld [vmem:[#allocation4 + $0x178] sm:$0xff] }
  0x31   :  { %725 = vmatprep.subr.mxu0 %v963_v0  ;;  %760 = vmatprep.subr.mxu1 %v963_v0  ;;  %v270_v34 = vld [vmem:[#allocation4 + $0x1a8] sm:$0xff]  ;;  %v269_v36 = vld [vmem:[#allocation4 + $0x1a0] sm:$0xff]  ;;  %v262_v45 = vld [vmem:[#allocation4 + $0x170] sm:$0xff]  ;;  %58 = vst.msk [vmem:[#allocation2] sm:$0xff] %vm57_vm1, %v59_v35 }
  0x32   :  { %726 = vmatpush3.msra.mxu0 %v76_v9  ;;  %761 = vmatpush3.msra.mxu1 %v168_v14  ;;  %v641_v37 = vld [vmem:[#allocation4 + $0x80] ss:$0 sm:$0xff]  ;;  %v265_v42 = vld [vmem:[#allocation4 + $0x188] sm:$0xff]  ;;  %v259_v48 = vld [vmem:[#allocation4 + $0x158] sm:$0xff] }
  0x33   :  { %727 = vmatprep.subr.mxu0 %v963_v0  ;;  %762 = vmatprep.subr.mxu1 %v963_v0  ;;  %v264_v43 = vld [vmem:[#allocation4 + $0x180] sm:$0xff]  ;;  %v261_v46 = vld [vmem:[#allocation4 + $0x168] sm:$0xff]  ;;  %v258_v49 = vld [vmem:[#allocation4 + $0x150] sm:$0xff] }
  0x34   :  { %728 = vmatpush3.msra.mxu0 %v75_v11  ;;  %763 = vmatpush3.msra.mxu1 %v167_v16  ;;  %v260_v47 = vld [vmem:[#allocation4 + $0x160] sm:$0xff]  ;;  %v257_v50 = vld [vmem:[#allocation4 + $0x148] sm:$0xff]  ;;  %v255_v52 = vld [vmem:[#allocation4 + $0x138] sm:$0xff] }
  0x35   :  { %729 = vmatprep.subr.mxu0 %v963_v0  ;;  %764 = vmatprep.subr.mxu1 %v963_v0  ;;  %v256_v51 = vld [vmem:[#allocation4 + $0x140] sm:$0xff]  ;;  %v254_v53 = vld [vmem:[#allocation4 + $0x130] sm:$0xff]  ;;  %v253_v54 = vld [vmem:[#allocation4 + $0x128] sm:$0xff] }
  0x36   :  { %730 = vmatpush3.msra.mxu0 %v74_v13  ;;  %765 = vmatpush3.msra.mxu1 %v166_v18  ;;  %v268_v55 = vld [vmem:[#allocation4 + $0x198] sm:$0xff]  ;;  %v252_v56 = vld [vmem:[#allocation4 + $0x120] sm:$0xff]  ;;  %v267_v57 = vld [vmem:[#allocation4 + $0x190] sm:$0xff] }
  0x37   :  { %731 = vmatprep.subr.mxu0 %v963_v0  ;;  %766 = vmatprep.subr.mxu1 %v963_v0  ;;  %v251_v58 = vld [vmem:[#allocation4 + $0x118] sm:$0xff]  ;;  %v250_v60 = vld [vmem:[#allocation4 + $0x110] sm:$0xff]  ;;  %v642_v63 = vld [vmem:[#allocation4 + $0x108] ss:$0 sm:$0xff] }
  0x38   :  { %732 = vmatpush3.msra.mxu0 %v73_v15  ;;  %767 = vmatpush3.msra.mxu1 %v165_v20  ;;  %v266_v59 = vld [vmem:[#allocation2] sm:$0xff]  ;;  %v466_v20 = vld [vmem:[#allocation4 + $0x1e8] sm:$0xff] }
  0x39   :  { %733 = vmatprep.subr.mxu0 %v963_v0  ;;  %768 = vmatprep.subr.mxu1 %v963_v0  ;;  %v644_v8 = vld [vmem:[#allocation4 + $0x1b0] ss:$0 sm:$0xff] }
  0x3a   :  { %734 = vmatpush3.msra.mxu0 %v72_v17  ;;  %769 = vmatpush3.msra.mxu1 %v164_v22  ;;  %v464_v22 = vld [vmem:[#allocation4 + $0x1d8] sm:$0xff] }
  0x3b   :  { %735 = vmatprep.subr.mxu0 %v963_v0  ;;  %770 = vmatprep.subr.mxu1 %v963_v0 }
  0x3c   :  { %736 = vmatpush3.msra.mxu0 %v71_v19  ;;  %771 = vmatpush3.msra.mxu1 %v163_v24  ;;  %v467_v19 = vld [vmem:[#allocation4 + $0x1f0] sm:$0xff] }
  0x3d   :  { %737 = vmatprep.subr.mxu0 %v963_v0  ;;  %772 = vmatprep.subr.mxu1 %v963_v0 }
  0x3e   :  { %738 = vmatpush3.msra.mxu0 %v70_v21  ;;  %773 = vmatpush3.msra.mxu1 %v162_v26  ;;  %v465_v21 = vld [vmem:[#allocation4 + $0x1e0] sm:$0xff] }
  0x3f   :  { %739 = vmatprep.subr.mxu0 %v963_v0  ;;  %774 = vmatprep.subr.mxu1 %v963_v0 }
  0x40   :  { %740 = vmatpush3.msra.mxu0 %v69_v23  ;;  %775 = vmatpush3.msra.mxu1 %v161_v28  ;;  %v463_v28 = vld [vmem:[#allocation4 + $0x1d0] sm:$0xff] }
  0x41   :  { %741 = vmatprep.subr.mxu0 %v963_v0  ;;  %776 = vmatprep.subr.mxu1 %v963_v0 }
  0x42   :  { %742 = vmatpush3.msra.mxu0 %v68_v25  ;;  %777 = vmatpush3.msra.mxu1 %v160_v31  ;;  %v461_v31 = vld [vmem:[#allocation4 + $0x1c0] sm:$0xff] }
  0x43   :  { %743 = vmatprep.subr.mxu0 %v963_v0  ;;  %778 = vmatprep.subr.mxu1 %v963_v0 }
  0x44   :  { %744 = vmatpush3.msra.mxu0 %v67_v27  ;;  %779 = vmatpush3.msra.mxu1 %v159_v32  ;;  %v460_v32 = vld [vmem:[#allocation4 + $0x1b8] sm:$0xff] }
  0x45   :  { %745 = vmatprep.subr.mxu0 %v963_v0  ;;  %780 = vmatprep.subr.mxu1 %v963_v0 }
  0x46   :  { %746 = vmatpush3.msra.mxu0 %v66_v29  ;;  %781 = vmatpush3.msra.mxu1 %v158_v33 }
  0x47   :  { %748 = vmatmul.mubr.f32.vlgmr.msra.gmra.mxu0 %v65_v30  ;;  %785 = vmatprep.subr.mxu0 %v963_v0  ;;  %v462_v30 = vld [vmem:[#allocation4 + $0x1c8] sm:$0xff] }
  0x48   :  { %793 = vmatprep.mubr.msk.f32.mxu0 %vm964_vm0, %v963_v0  ;;  %796 = vmatprep.subr.mxu1 %v963_v0 }
  0x49   :  { %786 = vmatpush3.msra.mxu0 %v270_v34  ;;  %61 = vrot.lane.b32.xlu0 %v59_v35, %s965_s0 }
  0x4a   :  { %787 = vmatprep.subr.mxu0 %v963_v0 }
  0x4b   :  { %788 = vmatpush3.msra.mxu0 %v269_v36 }
  0x4c   :  { %789 = vmatprep.subr.mxu0 %v963_v0 }
  0x4d   :  { %790 = vmatpush3.msra.mxu0 %v268_v55 }
  0x4e   :  { %791 = vmatprep.subr.mxu0 %v963_v0 }
  0x4f   :  { %792 = vmatpush3.msra.mxu0 %v267_v57 }
  0x50   :  { %794 = vmatmul.mubr.msk.f32.vlgmr.msra.gmra.mxu0 %vm57_vm1, %v266_v59  ;;  %831 = vmatprep.subr.mxu0 %v963_v0 }
  0x51   :  { %839 = vmatprep.mubr.msk.f32.mxu0 %vm964_vm0, %v963_v0  ;;  %832 = vmatpush3.msra.mxu0 %v467_v19 }
  0x52   :  { %833 = vmatprep.subr.mxu0 %v963_v0 }
  0x53   :  { %834 = vmatpush3.msra.mxu0 %v466_v20 }
  0x54   :  { %835 = vmatprep.subr.mxu0 %v963_v0 }
  0x55   :  { %836 = vmatpush3.msra.mxu0 %v465_v21 }
  0x56   :  { %837 = vmatprep.subr.mxu0 %v963_v0 }
  0x57   :  { %838 = vmatpush3.msra.mxu0 %v464_v22 }
  0x58   :  { %842 = vmatprep.subr.mxu0 %v963_v0 }
  0xbb   :  { %v62_v61 = vpop.permute.xlu0 %61 }
  0xbc   :  { %64 = vst.msk [vmem:[#allocation3] sm:$0xff] %vm57_vm1, %v62_v61 }
  0xc3   :  { %v428_v62 = vld [vmem:[#allocation3] sm:$0xff] }
  0xc4   :  { %430 = vrot.lane.b32.xlu1 %v428_v62, %s966_s2 }
 0x107   :  { %v153_v38 = vpop.f32.mrf.mxu0 }
 0x108   :  { %v154_v39 = vadd.f32 %v641_v37, %v153_v38  ;;  %v618_v38 = vlaneseq }
 0x109   :  { %v749_v40 = vpop.f32.mrf.mxu0 }
 0x10a   :  { %v157_v41 = vmax.f32 %v154_v39, 0.0  ;;  %v648_v40 = vld [vmem:[#allocation4 + $0x1f8] ss:$0 sm:$0xff] }
 0x10c   :  { %783 = vmatmul.mubr.f32.vlgmr.msra.gmra.mxu1 %v157_v41 }
 0x10d   :  { %797 = vmatpush3.msra.mxu1 %v265_v42  ;;  %828 = vmatprep.mubr.msk.f32.mxu1 %vm964_vm0, %v963_v0 }
 0x10e   :  { %798 = vmatprep.subr.mxu1 %v963_v0 }
 0x10f   :  { %799 = vmatpush3.msra.mxu1 %v264_v43  ;;  %v619_v43 = vand.u32 127, %v618_v38 }
 0x110   :  { %800 = vmatprep.subr.mxu1 %v963_v0  ;;  %v341_v5 = vpop.f32.mrf.mxu0 }
 0x111   :  { %801 = vmatpush3.msra.mxu1 %v263_v44  ;;  %vm620_vm2 = vcmp.ge.s32.totalorder %v619_v43, 96 }
 0x112   :  { %802 = vmatprep.subr.mxu1 %v963_v0  ;;  %v795_v6 = vpop.f32.mrf.mxu0 }
 0x113   :  { %803 = vmatpush3.msra.mxu1 %v262_v45 }
 0x114   :  { %804 = vmatprep.subr.mxu1 %v963_v0 }
 0x115   :  { %805 = vmatpush3.msra.mxu1 %v261_v46 }
 0x116   :  { %806 = vmatprep.subr.mxu1 %v963_v0 }
 0x117   :  { %807 = vmatpush3.msra.mxu1 %v260_v47 }
 0x118   :  { %808 = vmatprep.subr.mxu1 %v963_v0 }
 0x119   :  { %809 = vmatpush3.msra.mxu1 %v259_v48 }
 0x11a   :  { %810 = vmatprep.subr.mxu1 %v963_v0 }
 0x11b   :  { %811 = vmatpush3.msra.mxu1 %v258_v49 }
 0x11c   :  { %812 = vmatprep.subr.mxu1 %v963_v0 }
 0x11d   :  { %813 = vmatpush3.msra.mxu1 %v257_v50 }
 0x11e   :  { %814 = vmatprep.subr.mxu1 %v963_v0 }
 0x11f   :  { %815 = vmatpush3.msra.mxu1 %v256_v51 }
 0x120   :  { %816 = vmatprep.subr.mxu1 %v963_v0 }
 0x121   :  { %817 = vmatpush3.msra.mxu1 %v255_v52 }
 0x122   :  { %818 = vmatprep.subr.mxu1 %v963_v0 }
 0x123   :  { %819 = vmatpush3.msra.mxu1 %v254_v53 }
 0x124   :  { %820 = vmatprep.subr.mxu1 %v963_v0 }
 0x125   :  { %821 = vmatpush3.msra.mxu1 %v253_v54 }
 0x126   :  { %822 = vmatprep.subr.mxu1 %v963_v0 }
 0x127   :  { %823 = vmatpush3.msra.mxu1 %v252_v56 }
 0x128   :  { %824 = vmatprep.subr.mxu1 %v963_v0 }
 0x129   :  { %825 = vmatpush3.msra.mxu1 %v251_v58 }
 0x12a   :  { %826 = vmatprep.subr.mxu1 %v963_v0 }
 0x12b   :  { %827 = vmatpush3.msra.mxu1 %v250_v60 }
 0x136   :  { %v431_v23 = vpop.permute.xlu1 %430 }
 0x1cc   :  { %v245_v1 = vpop.f32.mrf.mxu1 }
 0x1cd   :  { %v246_v2 = vadd.f32 %v642_v63, %v245_v1 }
 0x1ce   :  { %v784_v3 = vpop.f32.mrf.mxu1 }
 0x1cf   :  { %v249_v4 = vmax.f32 %v246_v2, 0.0 }
 0x1d1   :  { %829 = vmatmul.mubr.f32.vlgmr.msra.gmra.mxu1 %v249_v4 }
 0x291   :  { %v411_v7 = vpop.f32.mrf.mxu1 }
 0x292   :  { %v412_v9 = vadd.f32 %v411_v7, %v341_v5 }
 0x293   :  { %v830_v10 = vpop.f32.mrf.mxu1 }
 0x294   :  { %v420_v11 = vadd.f32 %v644_v8, %v412_v9 }
 0x296   :  { %864 = vtanh.f32 %v420_v11  ;;  %v645_v13 = vmul.f32 -1.442695, %v420_v11 }
 0x298   :  { %866 = vpow2.f32 %v645_v13 }
 0x2a3   :  { %v865_v12 = vpop.eup %864 }
 0x2a4   :  { %435 = vrot.lane.b32.xlu0 %v865_v12, %s967_s28 }
 0x2a5   :  { %v867_v14 = vpop.eup %866 }
 0x2a6   :  { %v424_v15 = vadd.f32 1.0, %v867_v14 }
 0x2a8   :  { %868 = vrcp.f32 %v424_v15 }
 0x2b5   :  { %v869_v16 = vpop.eup %868 }
 0x2b6   :  { %v433_v24 = vmul.f32 %v869_v16, %v431_v23 }
 0x316   :  { %v436_v17 = vpop.permute.xlu0 %435 }
 0x317   :  { %v438_v18 = vmul.f32 %v869_v16, %v436_v17 }
 0x319   :  { %440 = vrot.lane.b32.xlu1 %v438_v18, %s966_s2 }
 0x38b   :  { %v441_v25 = vpop.permute.xlu1 %440 }
 0x38c   :  { %v443_v26 = vadd.f32 %v441_v25, %v433_v24 }
 0x38e   :  { %870 = vtanh.f32 %v443_v26  ;;  %456 = vrot.lane.b32.xlu1 %v443_v26, %s965_s0 }
 0x39b   :  { %v871_v27 = vpop.eup %870 }
 0x39c   :  { %446 = vrot.lane.b32.xlu0 %v871_v27, %s967_s28 }
 0x400   :  { %v457_v29 = vpop.permute.xlu1 %456 }
 0x401   :  { %459 = vst.msk [vmem:[#allocation3] sm:$0xff] %vm57_vm1, %v457_v29  ;;  %840 = vmatmul.mubr.msk.f32.vlgmr.msra.gmra.mxu0 %vm57_vm1, %v457_v29 }
 0x402   :  { %843 = vmatpush3.msra.mxu0 %v463_v28  ;;  %850 = vmatprep.mubr.msk.f32.mxu0 %vm964_vm0, %v963_v0 }
 0x403   :  { %844 = vmatprep.subr.mxu0 %v963_v0 }
 0x404   :  { %845 = vmatpush3.msra.mxu0 %v462_v30 }
 0x405   :  { %846 = vmatprep.subr.mxu0 %v963_v0 }
 0x406   :  { %847 = vmatpush3.msra.mxu0 %v461_v31 }
 0x407   :  { %848 = vmatprep.subr.mxu0 %v963_v0 }
 0x408   :  { %849 = vmatpush3.msra.mxu0 %v460_v32 }
 0x40e   :  { %v447_v33 = vpop.permute.xlu0 %446 }
 0x40f   :  { %v449_v34 = vmul.f32 %v869_v16, %v447_v33 }
 0x411   :  { %451 = vrot.lane.b32.xlu0 %v449_v34, %s966_s2 }
 0x483   :  { %v452_v35 = vpop.permute.xlu0 %451 }
 0x484   :  { %454 = vst.msk [vmem:[#allocation2] sm:$0xff] %vm57_vm1, %v452_v35  ;;  %851 = vmatmul.mubr.msk.f32.vlgmr.msra.gmra.mxu0 %vm57_vm1, %v452_v35 }
 0x4c1   :  { %v536_v36 = vpop.f32.mrf.mxu0 }
 0x4c3   :  { %v841_v37 = vpop.f32.mrf.mxu0 }
 0x544   :  { %v608_v39 = vpop.f32.mrf.mxu0 }
 0x545   :  { %v609_v41 = vadd.f32 %v608_v39, %v536_v36 }
 0x546   :  { %v852_v42 = vpop.f32.mrf.mxu0 }
 0x547   :  { %v617_v44 = vadd.f32 %v648_v40, %v609_v41 }
 0x549   :  { %v621_v0 = vmax.f32 %v617_v44, -20.0 }
 0x54b   :  { %v622_v45 = vmin.f32 %v621_v0, 2.0 }
 0x54d   :  { %v623_v46 = vsel %vm620_vm2, %v622_v45, %v617_v44 }
 0x54e   :  { %624 = vst [vmem:[#allocation10] sm:$0xff] %v623_v46 }
 0x54f   :  { %943 = shalt.err (!%p940_p5)
}
 0x550   :  { %634 = dma.vmem_to_hbm [thread:$0]  %s632_s30, 128, %s1088_s3, [#allocation6]  }
 0x551   :  { %956 = dma.done.wait [#allocation6], 128  }
 0x552   :  { %957 = vsyncadd [#allocation6], 4294967168 }
 0x553   :  { %638 = vsyncpa [#allocation5], 1 }
 0x554   :  { %639 = vsyncpa [#allocation8], 1 }
 0x555   :  { %640 = vsyncpa [#allocation6], 1 }

</bundles_post_ra>
